<compile_context>
chip_gen: v7x
topology: tpu7x:2x2x1
jax: 0.10.0
libtpu: 0.0.40
codegen_flags: <defaults>
</compile_context>

<pallas_src>
import functools

import jax
import jax.numpy as jnp
from jax.experimental import pallas as pl
from jax.experimental.pallas import tpu as pltpu

INPUT_SIZE = 784
HIDDEN_SIZE = 100
NUM_CLASSES = 10

_HIDDEN_PAD = 128   # next multiple of 128 >= HIDDEN_SIZE (lane-dense hidden)
_CLASS_PAD = 16     # small padded class dim: block last dim == full array dim


def _mlp_kernel(x_ref, w1_ref, b1_ref, w2_ref, b2_ref, o_ref):
    # Fused per-batch-tile: (x @ W1 + b1) -> ReLU -> (@ W2 + b2).
    # Both matmuls hit the MXU with f32 accumulation; operands may be bf16.
    x = x_ref[...]                                               # (TB, 784)
    h = jnp.dot(x, w1_ref[...], preferred_element_type=jnp.float32)
    h = jnp.maximum(h + b1_ref[...], 0.0)                        # (TB, 128) f32
    # Note (documented, review item): in the bf16 path the f32 hidden
    # activations are re-rounded to bf16 before the second matmul.
    logits = jnp.dot(h.astype(w2_ref.dtype), w2_ref[...],
                     preferred_element_type=jnp.float32)
    o_ref[...] = (logits + b2_ref[...]).astype(o_ref.dtype)      # (TB, 16)


def _pad_params(w1, b1, w2, b2):
    """Zero-pad params to MXU-friendly shapes.

    (784,100)->(784,128), (1,100)->(1,128), (100,10)->(128,16), (1,10)->(1,16).
    Exact: padded hidden units have zero in-weights and zero bias -> ReLU(0)=0,
    and their out-weights are zero; padded class columns are sliced off.
    """
    w1p = jnp.zeros((INPUT_SIZE, _HIDDEN_PAD), w1.dtype).at[:, :HIDDEN_SIZE].set(w1)
    b1p = jnp.zeros((1, _HIDDEN_PAD), b1.dtype).at[:, :HIDDEN_SIZE].set(b1)
    w2p = (jnp.zeros((_HIDDEN_PAD, _CLASS_PAD), w2.dtype)
           .at[:HIDDEN_SIZE, :NUM_CLASSES].set(w2))
    b2p = jnp.zeros((1, _CLASS_PAD), b2.dtype).at[:, :NUM_CLASSES].set(b2)
    return w1p, b1p, w2p, b2p


def _choose_tile(B, block_batch, gran):
    """Pick (batch_tile, padded_batch).  Prefers tiles that divide B exactly
    so the wrapper never has to materialize a padded copy of x (the dominant
    HBM operand).  Small batches are split in two when possible so the
    'parallel' grid axis can shard across v7x's two TensorCores."""
    if B <= block_batch:
        if B % (2 * gran) == 0 and (B // 2) >= gran:
            return B // 2, B          # grid=(2,) -> megacore split on v7x
        return B, B                   # single step; block == full array dim
    # Largest multiple of gran that divides B and fits the budget -> no pad.
    t = (block_batch // gran) * gran
    while t >= gran:
        if B % t == 0:
            return t, B
        t -= gran
    # Rare fallback: ragged batch with no usable divisor -> pad the batch.
    t = (block_batch // gran) * gran
    return t, pl.cdiv(B, t) * t


@functools.partial(jax.jit, static_argnames=("block_batch", "use_bf16"))
def neural_net_forward(x, w1, b1, w2, b2, *, block_batch=2048, use_bf16=True):
    """x: (B, 784) f32; returns logits (B, 10) f32.

    block_batch: max rows of x per grid step (default 2048; VMEM footprint is
    computed below and passed as vmem_limit_bytes so it fits on v5e too).
    use_bf16: cast x / W1 / W2 to bf16 for the MXU (f32 accumulation kept).
    """
    B = x.shape[0]
    assert x.shape[1] == INPUT_SIZE

    w1p, b1p, w2p, b2p = _pad_params(w1, b1, w2, b2)

    if use_bf16:
        x_in = x.astype(jnp.bfloat16)
        w1p = w1p.astype(jnp.bfloat16)
        w2p = w2p.astype(jnp.bfloat16)
    else:
        x_in = x
    # Biases stay f32: added after f32 accumulation.

    in_itemsize = 2 if use_bf16 else 4
    gran = 16 if use_bf16 else 8      # sublane granularity (packed bf16 tile)

    tb, b_pad = _choose_tile(B, block_batch, gran)
    if b_pad != B:
        # Fallback only; costs one extra HBM copy of x (see review note).
        x_in = jnp.pad(x_in, ((0, b_pad - B), (0, 0)))
    grid = (b_pad // tb,)

    # Explicit scoped-VMEM budget: double-buffered x & out tiles plus the
    # (double-buffered) resident params, with headroom.  Clamped to 48 MiB so
    # it stays within every generation's physical VMEM (v7x: 64 MiB).
    vmem_est = (2 * tb * INPUT_SIZE * in_itemsize
                + 2 * tb * _CLASS_PAD * 4
                + 2 * (INPUT_SIZE * _HIDDEN_PAD
                       + _HIDDEN_PAD * _CLASS_PAD) * in_itemsize
                + 2 * (_HIDDEN_PAD + _CLASS_PAD) * 4)
    vmem_limit = min(max(int(vmem_est * 1.5) + (4 << 20), 32 << 20), 48 << 20)

    cost = pl.CostEstimate(
        flops=2 * b_pad * (INPUT_SIZE * _HIDDEN_PAD + _HIDDEN_PAD * _CLASS_PAD),
        transcendentals=0,
        bytes_accessed=(b_pad * INPUT_SIZE * in_itemsize                  # x
                        + INPUT_SIZE * _HIDDEN_PAD * in_itemsize          # W1
                        + _HIDDEN_PAD * _CLASS_PAD * in_itemsize          # W2
                        + (_HIDDEN_PAD + _CLASS_PAD) * 4                  # biases
                        + b_pad * _CLASS_PAD * 4),                        # output
    )

    logits_pad = pl.pallas_call(
        _mlp_kernel,
        out_shape=jax.ShapeDtypeStruct((b_pad, _CLASS_PAD), jnp.float32),
        grid=grid,
        in_specs=[
            pl.BlockSpec((tb, INPUT_SIZE), lambda i: (i, 0)),              # x tile
            pl.BlockSpec((INPUT_SIZE, _HIDDEN_PAD), lambda i: (0, 0)),     # W1 resident
            pl.BlockSpec((1, _HIDDEN_PAD), lambda i: (0, 0)),              # b1 resident
            pl.BlockSpec((_HIDDEN_PAD, _CLASS_PAD), lambda i: (0, 0)),     # W2 resident
            pl.BlockSpec((1, _CLASS_PAD), lambda i: (0, 0)),               # b2 resident
        ],
        out_specs=pl.BlockSpec((tb, _CLASS_PAD), lambda i: (i, 0)),
        compiler_params=pltpu.CompilerParams(
            dimension_semantics=("parallel",),
            vmem_limit_bytes=vmem_limit,
        ),
        cost_estimate=cost,
    )(x_in, w1p, b1p, w2p, b2p)

    # Slice away batch padding (if any) and the padded class columns.
    return logits_pad[:B, :NUM_CLASSES]


def init_params(key):
    """Deterministic init mimicking torch.nn.Linear defaults:
    U(-1/sqrt(fan_in), 1/sqrt(fan_in)) for both weights and biases."""
    k1, k2, k3, k4 = jax.random.split(key, 4)
    bound1 = 1.0 / jnp.sqrt(INPUT_SIZE)
    bound2 = 1.0 / jnp.sqrt(HIDDEN_SIZE)
    w1 = jax.random.uniform(k1, (INPUT_SIZE, HIDDEN_SIZE), jnp.float32,
                            -bound1, bound1)
    b1 = jax.random.uniform(k2, (1, HIDDEN_SIZE), jnp.float32, -bound1, bound1)
    w2 = jax.random.uniform(k3, (HIDDEN_SIZE, NUM_CLASSES), jnp.float32,
                            -bound2, bound2)
    b2 = jax.random.uniform(k4, (1, NUM_CLASSES), jnp.float32, -bound2, bound2)
    return w1, b1, w2, b2


if __name__ == "__main__":
    # TODO(synk): only the forward pass is implemented; CrossEntropyLoss, Adam
    # and the train/test loops of the PyTorch module are out of scope here.
    key = jax.random.PRNGKey(0)
    kx, kp = jax.random.split(key)

    batch = 64   # small batch -> exercises the 2-way (v7x megacore) split path
    # layout: (batch, features) — flattened 28x28 MNIST-like images.
    x = jax.random.normal(kx, (batch, INPUT_SIZE), jnp.float32)
    w1, b1, w2, b2 = init_params(kp)

    # Reference in plain JAX (same semantics as the torch module).
    ref = jnp.maximum(x @ w1 + b1, 0.0) @ w2 + b2

    # Default path: bf16 operands, f32 accumulation -> loose tolerance.
    logits_bf16 = neural_net_forward(x, w1, b1, w2, b2)
    logits_bf16 = jax.block_until_ready(logits_bf16)
    assert logits_bf16.shape == (batch, NUM_CLASSES)
    assert jnp.allclose(logits_bf16, ref, atol=5e-2, rtol=5e-2)

    # Full-f32 path: exact vs. reference.
    logits_f32 = neural_net_forward(x, w1, b1, w2, b2, use_bf16=False)
    logits_f32 = jax.block_until_ready(logits_f32)
    assert logits_f32.shape == (batch, NUM_CLASSES)
    assert jnp.allclose(logits_f32, ref, atol=1e-4, rtol=1e-4)

    # Ragged small batch (matches the module's batch_size=50): tile == full
    # batch dim, no wrapper-side padding of x.
    x50 = x[:50]
    ref50 = jnp.maximum(x50 @ w1 + b1, 0.0) @ w2 + b2
    logits50 = neural_net_forward(x50, w1, b1, w2, b2, use_bf16=False)
    logits50 = jax.block_until_ready(logits50)
    assert logits50.shape == (50, NUM_CLASSES)
    assert jnp.allclose(logits50, ref50, atol=1e-4, rtol=1e-4)

    print("KERNEL_OK")
</pallas_src>

<mosaic_0001>
module attributes {stable_mosaic.version = 11 : i64} {
  func.func @_mlp_kernel(%arg0: i32, %arg1: memref<32x784xbf16, #tpu.memory_space<vmem>>, %arg2: memref<784x128xbf16, #tpu.memory_space<vmem>>, %arg3: memref<1x128xf32, #tpu.memory_space<vmem>>, %arg4: memref<128x16xbf16, #tpu.memory_space<vmem>>, %arg5: memref<1x16xf32, #tpu.memory_space<vmem>>, %arg6: memref<32x16xf32, #tpu.memory_space<vmem>>) attributes {dimension_semantics = [#tpu.dimension_semantics<parallel>], iteration_bounds = array<i64: 2>, scalar_prefetch = 0 : i64, scratch_operands = 0 : i64, tpu.core_type = #tpu.core_type<tc>, window_params = [{transform_indices = @transform_0, window_bounds = array<i64: 32, 784>}, {pipeline_mode = #tpu.pipeline_mode<synchronous>, transform_indices = @transform_1, window_bounds = array<i64: 784, 128>}, {pipeline_mode = #tpu.pipeline_mode<synchronous>, transform_indices = @transform_2, window_bounds = array<i64: 1, 128>}, {pipeline_mode = #tpu.pipeline_mode<synchronous>, transform_indices = @transform_3, window_bounds = array<i64: 128, 16>}, {pipeline_mode = #tpu.pipeline_mode<synchronous>, transform_indices = @transform_4, window_bounds = array<i64: 1, 16>}, {transform_indices = @transform_5, window_bounds = array<i64: 32, 16>}]} {
    %c0 = arith.constant 0 : index
    %c0_0 = arith.constant 0 : index
    %0 = vector.load %arg1[%c0, %c0_0] : memref<32x784xbf16, #tpu.memory_space<vmem>>, vector<32x784xbf16>
    %c0_1 = arith.constant 0 : index
    %c0_2 = arith.constant 0 : index
    %1 = vector.load %arg2[%c0_1, %c0_2] : memref<784x128xbf16, #tpu.memory_space<vmem>>, vector<784x128xbf16>
    %cst = arith.constant dense<0.000000e+00> : vector<32x128xf32>
    %2 = tpu.matmul %0, %1, %cst {dimension_numbers = #tpu.dot_dimension_numbers<[1], [0], [0], [1], [0, 0, 1, 1], [], []>} : vector<32x784xbf16>, vector<784x128xbf16>, vector<32x128xf32> -> vector<32x128xf32>
    %c0_3 = arith.constant 0 : index
    %c0_4 = arith.constant 0 : index
    %3 = vector.load %arg3[%c0_3, %c0_4] : memref<1x128xf32, #tpu.memory_space<vmem>>, vector<1x128xf32>
    %4 = vector.broadcast %3 : vector<1x128xf32> to vector<32x128xf32>
    %5 = arith.addf %2, %4 : vector<32x128xf32>
    %cst_5 = arith.constant 0.000000e+00 : f32
    %6 = vector.broadcast %cst_5 : f32 to vector<32x128xf32>
    %7 = arith.maximumf %5, %6 : vector<32x128xf32>
    %8 = arith.truncf %7 : vector<32x128xf32> to vector<32x128xbf16>
    %c0_6 = arith.constant 0 : index
    %c0_7 = arith.constant 0 : index
    %9 = vector.load %arg4[%c0_6, %c0_7] : memref<128x16xbf16, #tpu.memory_space<vmem>>, vector<128x16xbf16>
    %cst_8 = arith.constant dense<0.000000e+00> : vector<32x16xf32>
    %10 = tpu.matmul %8, %9, %cst_8 {dimension_numbers = #tpu.dot_dimension_numbers<[1], [0], [0], [1], [0, 0, 1, 1], [], []>} : vector<32x128xbf16>, vector<128x16xbf16>, vector<32x16xf32> -> vector<32x16xf32>
    %c0_9 = arith.constant 0 : index
    %c0_10 = arith.constant 0 : index
    %11 = vector.load %arg5[%c0_9, %c0_10] : memref<1x16xf32, #tpu.memory_space<vmem>>, vector<1x16xf32>
    %12 = vector.broadcast %11 : vector<1x16xf32> to vector<32x16xf32>
    %13 = arith.addf %10, %12 : vector<32x16xf32>
    %c0_11 = arith.constant 0 : index
    %c0_12 = arith.constant 0 : index
    %14 = vector.load %arg6[%c0_11, %c0_12] : memref<32x16xf32, #tpu.memory_space<vmem>>, vector<32x16xf32>
    tpu.vector_store %arg6[%c0_11, %c0_12], %13 {strides = array<i32>} : memref<32x16xf32, #tpu.memory_space<vmem>>, vector<32x16xf32>,
    return
  }
  func.func @transform_0(%arg0: i32) -> (i32, i32) {
    %c0_i32 = arith.constant 0 : i32
    %c0_i32_0 = arith.constant 0 : i32
    return %arg0, %c0_i32 : i32, i32
  }
  func.func @transform_1(%arg0: i32) -> (i32, i32) {
    %c0_i32 = arith.constant 0 : i32
    %c0_i32_0 = arith.constant 0 : i32
    %c0_i32_1 = arith.constant 0 : i32
    return %c0_i32, %c0_i32_0 : i32, i32
  }
  func.func @transform_2(%arg0: i32) -> (i32, i32) {
    %c0_i32 = arith.constant 0 : i32
    %c0_i32_0 = arith.constant 0 : i32
    %c0_i32_1 = arith.constant 0 : i32
    return %c0_i32, %c0_i32_0 : i32, i32
  }
  func.func @transform_3(%arg0: i32) -> (i32, i32) {
    %c0_i32 = arith.constant 0 : i32
    %c0_i32_0 = arith.constant 0 : i32
    %c0_i32_1 = arith.constant 0 : i32
    return %c0_i32, %c0_i32_0 : i32, i32
  }
  func.func @transform_4(%arg0: i32) -> (i32, i32) {
    %c0_i32 = arith.constant 0 : i32
    %c0_i32_0 = arith.constant 0 : i32
    %c0_i32_1 = arith.constant 0 : i32
    return %c0_i32, %c0_i32_0 : i32, i32
  }
  func.func @transform_5(%arg0: i32) -> (i32, i32) {
    %c0_i32 = arith.constant 0 : i32
    %c0_i32_0 = arith.constant 0 : i32
    return %arg0, %c0_i32 : i32, i32
  }
}

</mosaic_0001>

<bundles_post_ra>
// kernel: neural_net_forward.1
= control target key start
LH: loop header
LB: loop body
LE: loop exit
PB: predicated region body
PF: predicated region fallthrough
CT: control target
= control target key end

     0   :  { %s1439_s18 = smov 0   ;;  %s1661_s0 = inlined_call_operand.vmem [shape: bf16[64,784], index: 0, kind: input, shape index: {}]   ;;  %s1662_s1 = inlined_call_operand.vmem [shape: bf16[784,128], index: 1, kind: input, shape index: {}]   ;;  %s1663_s2 = inlined_call_operand.vmem [shape: f32[1,128], index: 2, kind: input, shape index: {}]   ;;  %s1664_s3 = inlined_call_operand.vmem [shape: bf16[128,16], index: 3, kind: input, shape index: {}]   ;;  %s1665_s4 = inlined_call_operand.vmem [shape: f32[1,16], index: 4, kind: input, shape index: {}]   ;;  %s1666_s5 = inlined_call_operand.vmem [shape: f32[64,16], index: 5, kind: output, shape index: {}]  }
   0x1 LB: > { %s1106_s19 = sadd.s32 4294967295, %s1407_s18   ;;  %p1110_p0 = scmp.ge.s32.totalorder %s1407_s18, 1  ;;  %s1407_s18 = sphi %s1439_s18, %s15_s18  }
   0x2   : > { %p189_p1 = scmp.lt.s32.totalorder %s1407_s18, 3 }
   0x4   : > { %p190_p2 = pnand %p1110_p0, %p189_p1 }
   0x5   : > { %v1324_v0 = vld [vmem:[%s1662_s1 + $0x40] sm:$0xff] (!%p190_p2)   ;;  %v1328_v4 = vld [vmem:[%s1662_s1 + $0x48] sm:$0xff] (!%p190_p2)   ;;  %v1332_v8 = vld [vmem:[%s1662_s1 + $0x50] sm:$0xff] (!%p190_p2)   ;;  %s1111_s25 = sshll.u32 (!%p190_p2), %s1106_s19, 2  ;;  %vm717_vm0 = vcmask (!%p190_p2), 130048  }
   0x6   : > { %193 = sbr.rel (%p190_p2) target bundleno = 521 (0x209), region = 40  ;;  %v1325_v1 = vld [vmem:[%s1662_s1] sm:$0xff] (!%p190_p2)   ;;  %1192 = vmatprep.subr.bf16.mxu0 (!%p190_p2), %v1324_v0  ;;  %v1329_v5 = vld [vmem:[%s1662_s1 + $0x8] sm:$0xff] (!%p190_p2)   ;;  %v1333_v9 = vld [vmem:[%s1662_s1 + $0x10] sm:$0xff] (!%p190_p2)   ;;  %p219_p3 = scmp.lt.s32.totalorder (!%p190_p2), %s1111_s25, 7 }
   0x7   : > { %v1326_v2 = vld [vmem:[%s1662_s1 + $0xc0] sm:$0xff] (!%p190_p2)   ;;  %1193 = vmatpush3.bf16.msra.mxu0 (!%p190_p2), %v1325_v1  ;;  %v1330_v6 = vld [vmem:[%s1662_s1 + $0xc8] sm:$0xff] (!%p190_p2)   ;;  %v1334_v10 = vld [vmem:[%s1662_s1 + $0xd0] sm:$0xff] (!%p190_p2)  }
   0x8   : > { %v1327_v3 = vld [vmem:[%s1662_s1 + $0x80] sm:$0xff] (!%p190_p2)   ;;  %1220 = vmatprep.subr.bf16.mxu1 (!%p190_p2), %v1326_v2  ;;  %1194 = vmatprep.subr.bf16.mxu0 (!%p190_p2), %v1328_v4  ;;  %v1331_v7 = vld [vmem:[%s1662_s1 + $0x88] sm:$0xff] (!%p190_p2)   ;;  %v1335_v11 = vld [vmem:[%s1662_s1 + $0x90] sm:$0xff] (!%p190_p2)  }
   0x9   : > { %1221 = vmatpush3.bf16.msra.mxu1 (!%p190_p2), %v1327_v3  ;;  %v1336_v12 = vld [vmem:[%s1662_s1 + $0x58] sm:$0xff] (!%p190_p2)   ;;  %v1340_v16 = vld [vmem:[%s1662_s1 + $0x60] sm:$0xff] (!%p190_p2)   ;;  %v1344_v20 = vld [vmem:[%s1662_s1 + $0x68] sm:$0xff] (!%p190_p2)  }
   0xa   : > { %1222 = vmatprep.subr.bf16.mxu1 (!%p190_p2), %v1330_v6  ;;  %v1337_v13 = vld [vmem:[%s1662_s1 + $0x18] sm:$0xff] (!%p190_p2)   ;;  %v1341_v17 = vld [vmem:[%s1662_s1 + $0x20] sm:$0xff] (!%p190_p2)   ;;  %v1345_v21 = vld [vmem:[%s1662_s1 + $0x28] sm:$0xff] (!%p190_p2)  }
   0xb   : > { %1195 = vmatpush3.bf16.msra.mxu0 (!%p190_p2), %v1329_v5  ;;  %v1338_v14 = vld [vmem:[%s1662_s1 + $0xd8] sm:$0xff] (!%p190_p2)   ;;  %v1342_v18 = vld [vmem:[%s1662_s1 + $0xe0] sm:$0xff] (!%p190_p2)   ;;  %v1346_v22 = vld [vmem:[%s1662_s1 + $0xe8] sm:$0xff] (!%p190_p2)  }
   0xc   : > { %1196 = vmatprep.subr.bf16.mxu0 (!%p190_p2), %v1332_v8  ;;  %v1339_v15 = vld [vmem:[%s1662_s1 + $0x98] sm:$0xff] (!%p190_p2)   ;;  %v1343_v19 = vld [vmem:[%s1662_s1 + $0xa0] sm:$0xff] (!%p190_p2)   ;;  %v1347_v23 = vld [vmem:[%s1662_s1 + $0xa8] sm:$0xff] (!%p190_p2)  }
   0xd   : > { %1223 = vmatpush3.bf16.msra.mxu1 %v1331_v7  ;;  %s1668_s25 = smov (!%p219_p3, %s1111_s25), 7  ;;  %v1348_v24 = vld [vmem:[%s1662_s1 + $0x70] sm:$0xff]   ;;  %v1352_v28 = vld [vmem:[%s1662_s1 + $0x78] sm:$0xff]   ;;  %v1359_v34 = vld [vmem:[%s1662_s1 + $0x140] sm:$0xff]  }
   0xe   : > { %1224 = vmatprep.subr.bf16.mxu1 %v1334_v10  ;;  %s1315_s24 = smul.u32 28, %s1668_s25  ;;  %v1349_v25 = vld [vmem:[%s1662_s1 + $0x30] sm:$0xff]   ;;  %v1353_v29 = vld [vmem:[%s1662_s1 + $0x38] sm:$0xff]   ;;  %v1363_v37 = vld [vmem:[%s1662_s1 + $0x100] sm:$0xff]   ;;  %s1114_s27 = sshll.u32 %s1668_s25, 3 }
   0xf   : > { %1197 = vmatpush3.bf16.msra.mxu0 %v1333_v9  ;;  %v1350_v26 = vld [vmem:[%s1662_s1 + $0xf0] sm:$0xff]   ;;  %v1354_v30 = vld [vmem:[%s1662_s1 + $0xf8] sm:$0xff]   ;;  %v1364_v38 = vld [vmem:[%s1662_s1 + $0x148] sm:$0xff]   ;;  %s229_s7 = scalar_lea.vmem %s1666_s5, %s1114_s27 }
  0x10   : > { %1198 = vmatprep.subr.bf16.mxu0 %v1336_v12  ;;  %v1351_v27 = vld [vmem:[%s1662_s1 + $0xb0] sm:$0xff]   ;;  %s1542_s10 = scalar_lea.vmem %s1661_s0, %s1315_s24  ;;  %v1358_v33 = vld [vmem:[%s1662_s1 + $0xb8] sm:$0xff]   ;;  %v1365_v39 = vld [vmem:[%s1662_s1 + $0x108] sm:$0xff]  }
  0x11   : > { %1225 = vmatpush3.bf16.msra.mxu1 %v1335_v11  ;;  %v1355_v31 = vld [vmem:[%s1542_s10] ss:$28 sps:$4 sm:$0xff]   ;;  %v1360_v35 = vld [vmem:[%s1542_s10 + $0x8] ss:$28 sps:$4 sm:$0xff]   ;;  %v1366_v40 = vld [vmem:[%s1662_s1 + $0x150] sm:$0xff]  }
  0x12   : > { %1226 = vmatprep.subr.bf16.mxu1 %v1338_v14  ;;  %v1357_v32 = vld [vmem:[%s1542_s10 + $0x4] ss:$28 sps:$4 sm:$0xff]   ;;  %v1362_v36 = vld [vmem:[%s1542_s10 + $0xc] ss:$28 sps:$4 sm:$0xff]   ;;  %v1367_v41 = vld [vmem:[%s1662_s1 + $0x110] sm:$0xff]  }
  0x13   : > { %1199 = vmatpush3.bf16.msra.mxu0 %v1337_v13  ;;  %756 = vmatprep.mubr.bf16.mxu0 %v1357_v32  ;;  %v1368_v42 = vld [vmem:[%s1662_s1 + $0x158] sm:$0xff]   ;;  %v1370_v46 = vld [vmem:[%s1662_s1 + $0x160] sm:$0xff]   ;;  %v1374_v50 = vld [vmem:[%s1662_s1 + $0x168] sm:$0xff]  }
  0x14   : > { %1200 = vmatprep.subr.bf16.mxu0 %v1340_v16  ;;  %805 = vmatprep.mubr.bf16.mxu1 %v1362_v36  ;;  %v1372_v43 = vld [vmem:[%s1542_s10 + $0x3c] ss:$28 sps:$4 sm:$0xff]   ;;  %v1377_v47 = vld [vmem:[%s1542_s10 + $0x44] ss:$28 sps:$4 sm:$0xff]   ;;  %v1376_v52 = vld [vmem:[%s1662_s1 + $0x128] sm:$0xff]  }
  0x15   : > { %1227 = vmatpush3.bf16.msra.mxu1 %v1339_v15  ;;  %v1369_v44 = vld [vmem:[%s1662_s1 + $0x118] sm:$0xff]   ;;  %v1371_v49 = vld [vmem:[%s1662_s1 + $0x120] sm:$0xff]   ;;  %v1380_v53 = vld [vmem:[%s1662_s1 + $0x170] sm:$0xff]  }
  0x16   : > { %1228 = vmatprep.subr.bf16.mxu1 %v1342_v18  ;;  %v1375_v45 = vld [vmem:[%s1542_s10 + $0x38] ss:$28 sps:$4 sm:$0xff]   ;;  %v1379_v48 = vld [vmem:[%s1542_s10 + $0x40] ss:$28 sps:$4 sm:$0xff]   ;;  %v1389_v56 = vld [vmem:[%s1542_s10 + $0x50] ss:$28 sps:$4 sm:$0xff]  }
  0x17   : > { %1201 = vmatpush3.bf16.msra.mxu0 %v1341_v17  ;;  %v1382_v51 = vld [vmem:[%s1662_s1 + $0x180] sm:$0xff]   ;;  %v1387_v54 = vld [vmem:[%s1542_s10 + $0x14] ss:$28 sps:$4 sm:$0xff]   ;;  %v1383_v58 = vld [vmem:[%s1662_s1 + $0x178] sm:$0xff]  }
  0x18   : > { %1202 = vmatprep.subr.bf16.mxu0 %v1344_v20  ;;  %v1388_v55 = vld [vmem:[%s1542_s10 + $0x18] ss:$28 sps:$4 sm:$0xff]   ;;  %v1385_v60 = vld [vmem:[%s1542_s10 + $0x10] ss:$28 sps:$4 sm:$0xff]   ;;  %v1392_v62 = vld [vmem:[%s1542_s10 + $0x48] ss:$28 sps:$4 sm:$0xff]  }
  0x19   : > { %1229 = vmatpush3.bf16.msra.mxu1 %v1343_v19  ;;  %v1381_v57 = vld [vmem:[%s1662_s1 + $0x130] sm:$0xff]   ;;  %v1384_v59 = vld [vmem:[%s1662_s1 + $0x138] sm:$0xff]   ;;  %v1390_v61 = vld [vmem:[%s1542_s10 + $0x4c] ss:$28 sps:$4 sm:$0xff]  }
  0x1a   : > { %1230 = vmatprep.subr.bf16.mxu1 %v1346_v22  ;;  %v1393_v63 = vld [vmem:[%s1664_s3] sm:$0xff]   ;;  %v1394_v0 = vld [vmem:[%s1664_s3 + $0x8] sm:$0xff]   ;;  %v1395_v1 = vld [vmem:[%s1664_s3 + $0x10] sm:$0xff]  }
  0x1b   : > { %1203 = vmatpush3.bf16.msra.mxu0 %v1345_v21  ;;  %v1396_v2 = vld [vmem:[%s1664_s3 + $0x18] sm:$0xff]   ;;  %v1397_v3 = vld [vmem:[%s1664_s3 + $0x20] sm:$0xff]   ;;  %v1398_v4 = vld [vmem:[%s1664_s3 + $0x28] sm:$0xff]  }
  0x1c   : > { %1204 = vmatprep.subr.bf16.mxu0 %v1348_v24  ;;  %v1399_v5 = vld [vmem:[%s1664_s3 + $0x30] sm:$0xff]   ;;  %v1400_v6 = vld [vmem:[%s1664_s3 + $0x38] sm:$0xff]   ;;  %v1115_v8 = vld [vmem:[%s1663_s2] ss:$0 sm:$0xff] }
  0x1d   : > { %1231 = vmatpush3.bf16.msra.mxu1 %v1347_v23 }
  0x1e   : > { %1232 = vmatprep.subr.bf16.mxu1 %v1350_v26 }
  0x1f   : > { %1205 = vmatpush3.bf16.msra.mxu0 %v1349_v25 }
  0x20   : > { %1206 = vmatprep.subr.bf16.mxu0 %v1352_v28 }
  0x21   : > { %1233 = vmatpush3.bf16.msra.mxu1 %v1351_v27 }
  0x22   : > { %1234 = vmatprep.subr.bf16.mxu1 %v1354_v30 }
  0x23   : > { %1207 = vmatpush3.bf16.msra.mxu0 %v1353_v29 }
  0x24   : > { %1248 = vmatprep.subr.bf16.mxu0 %v1359_v34 }
  0x25   : > { %1235 = vmatpush3.bf16.msra.mxu1 %v1358_v33 }
  0x26   : > { %757 = vmatmul.mubr.bf16.vlgmr.msra.gmra.mrb[0].mxu0 %v1355_v31  ;;  %1289 = vmatprep.subr.bf16.mxu1 %v1382_v51 }
  0x27   : > { %1249 = vmatpush3.bf16.msra.mxu0 %v1363_v37  ;;  %764 = vmatprep.mubr.bf16.mxu0 %v1372_v43 }
  0x28   : > { %806 = vmatmul.mubr.bf16.vlgmr.msra.gmra.mrb[0].mxu1 %v1360_v35  ;;  %1250 = vmatprep.subr.bf16.mxu0 %v1364_v38 }
  0x29   : > { %813 = vmatprep.mubr.bf16.mxu1 %v1377_v47  ;;  %1290 = vmatpush3.bf16.msra.mxu1 %v1382_v51 }
  0x2a   : > { %1295 = vmatprep.subr.bf16.mxu1 %v1393_v63 }
  0x2b   : > { %1251 = vmatpush3.bf16.msra.mxu0 %v1365_v39 }
  0x2c   : > { %1252 = vmatprep.subr.bf16.mxu0 %v1366_v40 }
  0x2e   : > { %765 = vmatmul.mubr.bf16.gmra.mrb[4].mxu0 %v1375_v45 }
  0x2f   : > { %1253 = vmatpush3.bf16.msra.mxu0 %v1367_v41  ;;  %854 = vmatprep.mubr.bf16.mxu0 %v1387_v54 }
  0x30   : > { %1254 = vmatprep.subr.bf16.mxu0 %v1368_v42  ;;  %814 = vmatmul.mubr.bf16.gmra.mrb[4].mxu1 %v1379_v48 }
  0x31   : > { %1291 = vmatprep.mubr.msk.bf16.mxu1 %vm717_vm0, %v1388_v55 }
  0x33   : > { %1255 = vmatpush3.bf16.msra.mxu0 %v1369_v44 }
  0x34   : > { %1256 = vmatprep.subr.bf16.mxu0 %v1370_v46 }
  0x37   : > { %1257 = vmatpush3.bf16.msra.mxu0 %v1371_v49 }
  0x38   : > { %1258 = vmatprep.subr.bf16.mxu0 %v1374_v50  ;;  %1292 = vmatmul.mubr.msk.bf16.vlgmr.msra.gmra.mrb[8].mxu1 %vm717_vm0, %v1389_v56 }
  0x39   : > { %1296 = vmatpush3.bf16.msra.mxu1 %v1393_v63 }
  0x3a   : > { %1297 = vmatprep.subr.bf16.mxu1 %v1394_v0 }
  0x3b   : > { %1259 = vmatpush3.bf16.msra.mxu0 %v1376_v52 }
  0x3c   : > { %1260 = vmatprep.subr.bf16.mxu0 %v1380_v53 }
  0x3d   : > { %1298 = vmatpush3.bf16.msra.mxu1 %v1394_v0 }
  0x3e   : > { %1299 = vmatprep.subr.bf16.mxu1 %v1395_v1 }
  0x3f   : > { %1261 = vmatpush3.bf16.msra.mxu0 %v1381_v57 }
  0x40   : > { %1262 = vmatprep.subr.bf16.mxu0 %v1383_v58 }
  0x41   : > { %1300 = vmatpush3.bf16.msra.mxu1 %v1395_v1 }
  0x42   : > { %1301 = vmatprep.subr.bf16.mxu1 %v1396_v2 }
  0x43   : > { %1263 = vmatpush3.bf16.msra.mxu0 %v1384_v59 }
  0x45   : > { %1302 = vmatpush3.bf16.msra.mxu1 %v1396_v2 }
  0x46   : > { %855 = vmatmul.mubr.bf16.vlgmr.msra.gmra.mrb[8].mxu0 %v1385_v60  ;;  %1303 = vmatprep.subr.bf16.mxu1 %v1397_v3 }
  0x47   : > { %862 = vmatprep.mubr.bf16.mxu0 %v1390_v61 }
  0x49   : > { %1304 = vmatpush3.bf16.msra.mxu1 %v1397_v3 }
  0x4a   : > { %1305 = vmatprep.subr.bf16.mxu1 %v1398_v4 }
  0x4d   : > { %1306 = vmatpush3.bf16.msra.mxu1 %v1398_v4 }
  0x4e   : > { %863 = vmatmul.mubr.bf16.gmra.mrb[12].mxu0 %v1392_v62  ;;  %1307 = vmatprep.subr.bf16.mxu1 %v1399_v5 }
  0x51   : > { %1308 = vmatpush3.bf16.msra.mxu1 %v1399_v5 }
  0x52   : > { %1309 = vmatprep.subr.bf16.mxu1 %v1400_v6 }
  0x55   : > { %1310 = vmatpush3.bf16.msra.mxu1 %v1400_v6  ;;  %v1181_v6 = vld [vmem:[%s1665_s4] ss:$0 sm:$0xff] }
  0xf9   : > { %v1208_v7 = vpop.f32.mrb[0].mxu0 }
  0xfa   : > { %v1209_v9 = vpop.f32.mrb[1].mxu0 }
  0xfb   : > { %v1210_v10 = vadd.f32 %v1209_v9, %v1208_v7  ;;  %v1211_v11 = vpop.f32.mrb[2].mxu0  ;;  %v1236_v12 = vpop.f32.mrb[0].mxu1 }
  0xfc   : > { %v1212_v13 = vpop.f32.mrb[3].mxu0  ;;  %v1237_v16 = vpop.f32.mrb[1].mxu1 }
  0xfd   : > { %v759_v14 = vadd.f32 %v1210_v10, %v1115_v8  ;;  %v1213_v15 = vadd.f32 %v1212_v13, %v1211_v11  ;;  %v1238_v17 = vadd.f32 %v1237_v16, %v1236_v12  ;;  %v1239_v18 = vpop.f32.mrb[2].mxu1 }
  0xfe   : > { %v1240_v20 = vpop.f32.mrb[3].mxu1 }
  0xff   : > { %v762_v19 = vadd.f32 %v1213_v15, %v1115_v8  ;;  %v808_v21 = vadd.f32 %v1238_v17, %v759_v14  ;;  %v1241_v22 = vadd.f32 %v1240_v20, %v1239_v18 }
 0x101   : > { %v811_v23 = vadd.f32 %v1241_v22, %v762_v19  ;;  %v1214_v24 = vpop.f32.mrb[4].mxu0 }
 0x102   : > { %v1215_v25 = vpop.f32.mrb[5].mxu0 }
 0x103   : > { %v1216_v26 = vadd.f32 %v1215_v25, %v1214_v24  ;;  %v1217_v27 = vpop.f32.mrb[6].mxu0  ;;  %v1242_v28 = vpop.f32.mrb[4].mxu1 }
 0x104   : > { %v1218_v29 = vpop.f32.mrb[7].mxu0  ;;  %v1243_v32 = vpop.f32.mrb[5].mxu1 }
 0x105   : > { %v767_v30 = vadd.f32 %v1216_v26, %v1115_v8  ;;  %v1219_v31 = vadd.f32 %v1218_v29, %v1217_v27  ;;  %v1244_v33 = vadd.f32 %v1243_v32, %v1242_v28  ;;  %v1245_v34 = vpop.f32.mrb[6].mxu1 }
 0x106   : > { %v1246_v36 = vpop.f32.mrb[7].mxu1 }
 0x107   : > { %v770_v35 = vadd.f32 %v1219_v31, %v1115_v8  ;;  %v816_v37 = vadd.f32 %v1244_v33, %v767_v30  ;;  %v1247_v38 = vadd.f32 %v1246_v36, %v1245_v34 }
 0x109   : > { %v819_v39 = vadd.f32 %v1247_v38, %v770_v35 }
 0x10b   : > { %v1293_v40 = vpop.f32.mrb[8].mxu1 }
 0x10c   : > { %v905_v41 = vpop.f32.mrb[9].mxu1 }
 0x10d   : > { %v1294_v42 = vpop.f32.mrb[10].mxu1 }
 0x10e   : > { %v908_v43 = vpop.f32.mrb[11].mxu1 }
 0x119   : > { %v1264_v44 = vpop.f32.mrb[8].mxu0 }
 0x11a   : > { %v1265_v45 = vpop.f32.mrb[9].mxu0 }
 0x11b   : > { %v1266_v46 = vadd.f32 %v1265_v45, %v1264_v44  ;;  %v1267_v47 = vpop.f32.mrb[10].mxu0 }
 0x11c   : > { %v1268_v48 = vpop.f32.mrb[11].mxu0 }
 0x11d   : > { %v1269_v49 = vadd.f32 %v1268_v48, %v1267_v47  ;;  %v857_v50 = vadd.f32 %v1266_v46, %v808_v21 }
 0x11f   : > { %v906_v51 = vadd.f32 %v905_v41, %v857_v50  ;;  %v860_v52 = vadd.f32 %v1269_v49, %v811_v23 }
 0x121   : > { %v909_v53 = vadd.f32 %v908_v43, %v860_v52  ;;  %v1270_v54 = vpop.f32.mrb[12].mxu0  ;;  %v920_v56 = vmax.f32 %v906_v51, 0.0 }
 0x122   : > { %v1271_v55 = vpop.f32.mrb[13].mxu0 }
 0x123   : > { %v921_v57 = vmax.f32 %v909_v53, 0.0  ;;  %v1272_v58 = vadd.f32 %v1271_v55, %v1270_v54  ;;  %v1273_v59 = vpop.f32.mrb[14].mxu0 }
 0x124   : > { %v1274_v60 = vpop.f32.mrb[15].mxu0 }
 0x125   : > { %v924_v61 = vpack.c.bf16 %v921_v57, %v920_v56  ;;  %v865_v62 = vadd.f32 %v1272_v58, %v816_v37  ;;  %v1275_v63 = vadd.f32 %v1274_v60, %v1273_v59 }
 0x127   : > { %v914_v0 = vadd.f32 %v1293_v40, %v865_v62  ;;  %v868_v1 = vadd.f32 %v1275_v63, %v819_v39  ;;  %1311 = vmatprep.mubr.bf16.mxu1 %v924_v61 }
 0x129   : > { %v917_v2 = vadd.f32 %v1294_v42, %v868_v1  ;;  %v922_v3 = vmax.f32 %v914_v0, 0.0 }
 0x12b   : > { %v923_v4 = vmax.f32 %v917_v2, 0.0 }
 0x12d   : > { %v925_v5 = vpack.c.bf16 %v923_v4, %v922_v3 }
 0x12f   : > { %1312 = vmatmul.mubr.bf16.vlgmr.msra.gmra.mrb[12].mxu1 %v925_v5 }
 0x202   : > { %v1313_v7 = vpop.f32.mrb[12].mxu1 }
 0x203   : > { %v1031_v8 = vpop.f32.mrb[13].mxu1  ;;  %v1040_v13 = vadd.f32 %v1313_v7, %v1181_v6 }
 0x204   : > { %v1032_v9 = vadd.f32 %v1181_v6, %v1031_v8  ;;  %v1314_v10 = vpop.f32.mrb[14].mxu1 }
 0x205   : > { %v1034_v11 = vpop.f32.mrb[15].mxu1  ;;  %v1043_v14 = vadd.f32 %v1314_v10, %v1181_v6  ;;  %1048 = vst.msk [vmem:[%s229_s7 + $0x10] sm:$0xff] %vm717_vm0, %v1040_v13 }
 0x206   : > { %1046 = vst.msk [vmem:[%s229_s7] sm:$0xff] %vm717_vm0, %v1032_v9  ;;  %v1035_v12 = vadd.f32 %v1181_v6, %v1034_v11 }
 0x207   : > { %1049 = vst.msk [vmem:[%s229_s7 + $0x18] sm:$0xff] %vm717_vm0, %v1043_v14 }
 0x208   : > { %1047 = vst.msk [vmem:[%s229_s7 + $0x8] sm:$0xff] %vm717_vm0, %v1035_v12 }
 0x209 PF: > { %s15_s18 = sadd.s32 1, %s1407_s18  }
 0x20a   : > { %p12_p4 = scmp.ge.s32.totalorder %s15_s18, 4  }
 0x20c   :  { %14 = sbr.rel (!%p12_p4) target bundleno = 1 (0x1), region = 70 }

</bundles_post_ra>
